<compile_context>
chip_gen: v7x
topology: tpu7x:2x2x1
jax: 0.10.0
libtpu: 0.0.40
codegen_flags: <defaults>
</compile_context>

<pallas_src>
import math

import jax
import jax.numpy as jnp
from jax.experimental import pallas as pl
from jax.experimental.pallas import tpu as pltpu


def _round_up(x, m):
    return ((x + m - 1) // m) * m


def _device_tuning():
    """Per-generation (tile_byte_cap, vmem_limit_bytes, min_grid_steps, kind)."""
    try:
        kind = jax.devices()[0].device_kind.lower()
    except Exception:  # pragma: no cover - defensive
        kind = ""
    if "v7" in kind:
        # 64 MiB VMEM per TensorCore, 2 TCs: modest buffers, want >=4 steps.
        return 5 * 1024 * 1024, 56 * 1024 * 1024, 4, kind
    if "v6" in kind:
        # 128 MiB physical VMEM: big tiles amortize per-step overhead.
        return 8 * 1024 * 1024, 96 * 1024 * 1024, 1, kind
    if "v5" in kind:
        # 128 MiB physical, but raise the 16 MiB default scoped limit.
        return 6 * 1024 * 1024, 64 * 1024 * 1024, 1, kind
    # Unknown generation: conservative sizing that fits every chip.
    return 4 * 1024 * 1024, 48 * 1024 * 1024, 2, kind


def _compute_dtype(dtype, device_kind):
    """bf16 math is native on v6e/v7x; upcast everywhere else / for other dtypes."""
    if dtype == jnp.float32:
        return jnp.float32
    if dtype == jnp.bfloat16 and ("v6" in device_kind or "v7" in device_kind):
        return jnp.bfloat16
    return jnp.float32


def _make_fusion_kernel(alpha, compute_dtype):
    alpha = float(alpha)
    beta = 1.0 - alpha

    def kernel(w_ref, text_ref, xreact_ref, xwant_ref, out_ref):
        # w_ref: (1, C) replicated W; others: (block_rows, C) tiles.
        w = w_ref[...].astype(compute_dtype)
        t = text_ref[...].astype(compute_dtype)
        xr = xreact_ref[...].astype(compute_dtype)
        xw = xwant_ref[...].astype(compute_dtype)
        # alpha*(t + W*xr) + (1-alpha)*(t + W*xw) == t + W*(alpha*xr + (1-alpha)*xw)
        out_ref[...] = (t + w * (alpha * xr + beta * xw)).astype(out_ref.dtype)

    return kernel


def _choose_group(rows, hidden):
    """Minimal g with (g*hidden) % 128 == 0 and g | rows; 0 => no folding works."""
    if hidden % 128 == 0:
        return 1
    g = 128 // math.gcd(hidden, 128)
    if g <= rows and rows % g == 0:
        return g
    return 0


def _pick_block_rows(rows2, lane_width, dtype_bytes, cap_bytes, sublane, min_steps):
    """Fixed-size row tile: largest multiple of `sublane` under cap_bytes,
    optionally split so the grid has at least `min_steps` steps (multi-TC)."""
    bytes_per_row = max(1, lane_width * dtype_bytes)
    target = max(sublane, (cap_bytes // bytes_per_row) // sublane * sublane)
    if min_steps > 1:
        per_step = -(-rows2 // min_steps)  # ceil div
        per_step = max(sublane, _round_up(per_step, sublane))
        target = min(target, per_step)
    if target >= rows2:
        # Single tile covering the whole row extent (block == full dim is legal).
        return rows2
    return target


def fushion(text_emb, xReact_emb, xWant_emb, W, alpha):
    """z = alpha*(text + W*xReact) + (1-alpha)*(text + W*xWant).

    text_emb / xReact_emb / xWant_emb: (..., hidden), same shape.
    W: (hidden,) learned vector. alpha: Python float hyperparameter.
    """
    assert text_emb.shape == xReact_emb.shape == xWant_emb.shape
    orig_shape = text_emb.shape
    hidden = orig_shape[-1]
    assert W.shape == (hidden,)

    rows = math.prod(orig_shape[:-1]) if len(orig_shape) > 1 else 1
    dtype = text_emb.dtype
    dtype_bytes = jnp.dtype(dtype).itemsize

    tile_cap, vmem_limit, min_steps, kind = _device_tuning()
    compute_dtype = _compute_dtype(dtype, kind)

    # --- make the last dim lane-dense (multiple of 128) -------------------
    g = _choose_group(rows, hidden)
    if g == 0:
        # No row-folding possible: pad hidden to the next multiple of 128.
        hidden_use = _round_up(hidden, 128)
        pad = hidden_use - hidden
        pad_cfg = [(0, 0)] * (len(orig_shape) - 1) + [(0, pad)]
        text_emb = jnp.pad(text_emb, pad_cfg)
        xReact_emb = jnp.pad(xReact_emb, pad_cfg)
        xWant_emb = jnp.pad(xWant_emb, pad_cfg)
        W_use = jnp.pad(W, (0, pad))
        g = 1
        padded = True
    else:
        hidden_use = hidden
        W_use = W
        padded = False

    lane_width = g * hidden_use
    rows2 = rows // g

    text2 = text_emb.reshape(rows2, lane_width)
    xreact2 = xReact_emb.reshape(rows2, lane_width)
    xwant2 = xWant_emb.reshape(rows2, lane_width)
    # W broadcasts along the hidden axis; replicate it g times to match folding.
    w_tiled = jnp.tile(W_use, g).reshape(1, lane_width)

    # --- tiling ------------------------------------------------------------
    # Sublane granularity scales with packing (f32 -> 8, bf16 -> 16, int8 -> 32).
    sublane = 8 * max(1, 4 // dtype_bytes)
    block_rows = _pick_block_rows(rows2, lane_width, dtype_bytes, tile_cap,
                                  sublane, min_steps)
    grid = (pl.cdiv(rows2, block_rows),)

    data_spec = pl.BlockSpec((block_rows, lane_width), lambda i: (i, 0))
    w_spec = pl.BlockSpec((1, lane_width), lambda i: (0, 0))

    n_elems = rows2 * lane_width
    cost = pl.CostEstimate(
        flops=5 * n_elems,
        transcendentals=0,
        bytes_accessed=4 * n_elems * dtype_bytes + lane_width * dtype_bytes,
    )

    out = pl.pallas_call(
        _make_fusion_kernel(alpha, compute_dtype),
        out_shape=jax.ShapeDtypeStruct((rows2, lane_width), dtype),
        grid=grid,
        in_specs=[w_spec, data_spec, data_spec, data_spec],
        out_specs=data_spec,
        compiler_params=pltpu.CompilerParams(
            dimension_semantics=("parallel",),
            vmem_limit_bytes=vmem_limit,
        ),
        cost_estimate=cost,
    )(w_tiled, text2, xreact2, xwant2)

    out = out.reshape(orig_shape[:-1] + (hidden_use,))
    if padded:
        out = out[..., :hidden]
    return out


if __name__ == "__main__":
    key = jax.random.PRNGKey(0)
    k1, k2, k3, k4 = jax.random.split(key, 4)

    # Small shapes consistent with the module: (batch, seq, text_feat_dim)
    batch, seq, hidden = 2, 8, 32
    text_emb = jax.random.normal(k1, (batch, seq, hidden), dtype=jnp.float32)
    xReact_emb = jax.random.normal(k2, (batch, seq, hidden), dtype=jnp.float32)
    xWant_emb = jax.random.normal(k3, (batch, seq, hidden), dtype=jnp.float32)
    W = jax.random.normal(k4, (hidden,), dtype=jnp.float32)  # nn.Parameter

    alpha = 0.6  # args.weight_fuse_relation (Python hyperparameter)

    z = fushion(text_emb, xReact_emb, xWant_emb, W, alpha)
    jax.block_until_ready(z)

    # Pure-JAX reference (mirrors the PyTorch forward exactly)
    z1_ref = text_emb + W * xReact_emb
    z2_ref = text_emb + W * xWant_emb
    ref = alpha * z1_ref + (1.0 - alpha) * z2_ref
    assert z.shape == ref.shape
    assert jnp.allclose(z, ref, atol=1e-5, rtol=1e-5), "mismatch vs reference"

    print("KERNEL_OK")
</pallas_src>

<mosaic_0001>
module attributes {stable_mosaic.version = 11 : i64} {
  func.func @kernel(%arg0: i32, %arg1: memref<1x128xf32, #tpu.memory_space<vmem>>, %arg2: memref<4x128xf32, #tpu.memory_space<vmem>>, %arg3: memref<4x128xf32, #tpu.memory_space<vmem>>, %arg4: memref<4x128xf32, #tpu.memory_space<vmem>>, %arg5: memref<4x128xf32, #tpu.memory_space<vmem>>) attributes {dimension_semantics = [#tpu.dimension_semantics<parallel>], iteration_bounds = array<i64: 1>, scalar_prefetch = 0 : i64, scratch_operands = 0 : i64, tpu.core_type = #tpu.core_type<tc>, window_params = [{pipeline_mode = #tpu.pipeline_mode<synchronous>, transform_indices = @transform_0, window_bounds = array<i64: 1, 128>}, {transform_indices = @transform_1, window_bounds = array<i64: 4, 128>}, {transform_indices = @transform_2, window_bounds = array<i64: 4, 128>}, {transform_indices = @transform_3, window_bounds = array<i64: 4, 128>}, {transform_indices = @transform_4, window_bounds = array<i64: 4, 128>}]} {
    %c0 = arith.constant 0 : index
    %c0_0 = arith.constant 0 : index
    %0 = vector.load %arg1[%c0, %c0_0] : memref<1x128xf32, #tpu.memory_space<vmem>>, vector<1x128xf32>
    %c0_1 = arith.constant 0 : index
    %c0_2 = arith.constant 0 : index
    %1 = vector.load %arg2[%c0_1, %c0_2] : memref<4x128xf32, #tpu.memory_space<vmem>>, vector<4x128xf32>
    %c0_3 = arith.constant 0 : index
    %c0_4 = arith.constant 0 : index
    %2 = vector.load %arg3[%c0_3, %c0_4] : memref<4x128xf32, #tpu.memory_space<vmem>>, vector<4x128xf32>
    %c0_5 = arith.constant 0 : index
    %c0_6 = arith.constant 0 : index
    %3 = vector.load %arg4[%c0_5, %c0_6] : memref<4x128xf32, #tpu.memory_space<vmem>>, vector<4x128xf32>
    %cst = arith.constant 6.000000e-01 : f32
    %4 = vector.broadcast %cst : f32 to vector<4x128xf32>
    %5 = arith.mulf %4, %2 : vector<4x128xf32>
    %cst_7 = arith.constant 4.000000e-01 : f32
    %6 = vector.broadcast %cst_7 : f32 to vector<4x128xf32>
    %7 = arith.mulf %6, %3 : vector<4x128xf32>
    %8 = arith.addf %5, %7 : vector<4x128xf32>
    %9 = vector.broadcast %0 : vector<1x128xf32> to vector<4x128xf32>
    %10 = arith.mulf %9, %8 : vector<4x128xf32>
    %11 = arith.addf %1, %10 : vector<4x128xf32>
    %c0_8 = arith.constant 0 : index
    %c0_9 = arith.constant 0 : index
    %12 = vector.load %arg5[%c0_8, %c0_9] : memref<4x128xf32, #tpu.memory_space<vmem>>, vector<4x128xf32>
    tpu.vector_store %arg5[%c0_8, %c0_9], %11 {strides = array<i32>} : memref<4x128xf32, #tpu.memory_space<vmem>>, vector<4x128xf32>,
    return
  }
  func.func @transform_0(%arg0: i32) -> (i32, i32) {
    %c0_i32 = arith.constant 0 : i32
    %c0_i32_0 = arith.constant 0 : i32
    %c0_i32_1 = arith.constant 0 : i32
    return %c0_i32, %c0_i32_0 : i32, i32
  }
  func.func @transform_1(%arg0: i32) -> (i32, i32) {
    %c0_i32 = arith.constant 0 : i32
    %c0_i32_0 = arith.constant 0 : i32
    return %arg0, %c0_i32 : i32, i32
  }
  func.func @transform_2(%arg0: i32) -> (i32, i32) {
    %c0_i32 = arith.constant 0 : i32
    %c0_i32_0 = arith.constant 0 : i32
    return %arg0, %c0_i32 : i32, i32
  }
  func.func @transform_3(%arg0: i32) -> (i32, i32) {
    %c0_i32 = arith.constant 0 : i32
    %c0_i32_0 = arith.constant 0 : i32
    return %arg0, %c0_i32 : i32, i32
  }
  func.func @transform_4(%arg0: i32) -> (i32, i32) {
    %c0_i32 = arith.constant 0 : i32
    %c0_i32_0 = arith.constant 0 : i32
    return %arg0, %c0_i32 : i32, i32
  }
}

</mosaic_0001>

<bundles_post_ra>
// kernel: tpu_custom_call.1
= control target key start
LH: loop header
LB: loop body
LE: loop exit
PB: predicated region body
PF: predicated region fallthrough
CT: control target
= control target key end

     0   :  { %9 = vsyncpa [#allocation3], 0  ;;  %s220_s0 = inlined_call_operand.hbm [shape: f32[1,128], index: 0, kind: input, shape index: {}]   ;;  %s221_s1 = inlined_call_operand.hbm [shape: f32[4,128], index: 1, kind: input, shape index: {}]   ;;  %s222_s2 = inlined_call_operand.vmem [shape: f32[4,128], index: 2, kind: input, shape index: {}]   ;;  %s223_s3 = inlined_call_operand.vmem [shape: f32[4,128], index: 3, kind: input, shape index: {}]   ;;  %s224_s4 = inlined_call_operand.hbm [shape: f32[4,128], index: 4, kind: output, shape index: {}]  }
   0x1   :  { %10 = vsyncpa [#allocation6], 0 }
   0x2   :  { %11 = vsyncpa [#allocation4], 0  ;;  %s150_s15 = smov [#allocation2]   ;;  %s151_s17 = smov [#allocation5]  }
   0x3   :  { %s18_s16 = sshll.u32 %s150_s15, 4  ;;  %s28_s18 = sshll.u32 %s151_s17, 4  ;;  %s19_s16 = int_to_ptr.vmem [resolvable:$true] %s18_s16  ;;  %s29_s18 = int_to_ptr.vmem [resolvable:$true] %s28_s18 }
   0x4   :  { %s78_s21 = scalar_lea.hbm %s220_s0, 16 }
   0x5   :  { %p79_p0 = scmp.ne.s32.totalorder %s220_s0, %s78_s21  ;;  %p82_p1 = scmp.lt.u32.totalorder %s78_s21, %s220_s0 }
   0x7   :  { %p84_p2 = pnand %p82_p1, %p79_p0 }
   0x9   :  { %87 = shalt.err (!%p84_p2)
}
   0xa   :  { %s88_s26 = scalar_lea.vmem %s19_s16, 16  ;;  %s92_s27 = scalar_lea.vmem %s19_s16, 32 }
   0xb   :  { %p89_p3 = scmp.ne.s32.totalorder %s19_s16, %s88_s26  ;;  %p93_p4 = scmp.lt.s32.totalorder %s19_s16, %s19_s16 }
   0xc   :  { %p94_p5 = scmp.lt.s32.totalorder %s92_s27, %s88_s26 }
   0xe   :  { %p95_p6 = por %p94_p5, %p93_p4 }
  0x10   :  { %p96_p7 = pnand %p95_p6, %p89_p3 }
  0x12   :  { %99 = shalt.err (!%p96_p7)
}
  0x13   :  { %21 = dma.hbm_to_vmem [thread:$0]  %s220_s0, 16, %s19_s16, [#allocation3]  }
  0x14   :  { %s100_s6 = scalar_lea.hbm %s221_s1, 64 }
  0x15   :  { %p101_p8 = scmp.ne.s32.totalorder %s221_s1, %s100_s6  ;;  %p104_p9 = scmp.lt.u32.totalorder %s100_s6, %s221_s1 }
  0x17   :  { %p106_p10 = pnand %p104_p9, %p101_p8 }
  0x19   :  { %109 = shalt.err (!%p106_p10)
}
  0x1a   :  { %s110_s11 = scalar_lea.vmem %s29_s18, 64  ;;  %p115_p12 = scmp.lt.s32.totalorder %s29_s18, %s29_s18 }
  0x1b   :  { %p111_p11 = scmp.ne.s32.totalorder %s29_s18, %s110_s11  ;;  %p116_p13 = scmp.lt.s32.totalorder %s110_s11, %s110_s11 }
  0x1d   :  { %p117_p0 = por %p116_p13, %p115_p12 }
  0x1f   :  { %p118_p1 = pnand %p117_p0, %p111_p11 }
  0x21   :  { %121 = shalt.err (!%p118_p1)
}
  0x22   :  { %31 = dma.hbm_to_vmem [thread:$0]  %s221_s1, 64, %s29_s18, [#allocation6]  }
  0x23   :  { %144 = dma.done.wait [#allocation3], 16  }
  0x24   :  { %145 = vsyncadd [#allocation3], 4294967280 }
  0x25   :  { %146 = dma.done.wait [#allocation6], 64  }
  0x26   :  { %147 = vsyncadd [#allocation6], 4294967232  ;;  %v44_v0 = vld [vmem:[%s222_s2] sm:$0xf]  ;;  %v74_v4 = vld [vmem:[#allocation2] ss:$0 sm:$0xff] }
  0x27   :  { %v45_v1 = vld [vmem:[%s223_s3] sm:$0xf]  ;;  %v46_v2 = vmul.f32 0.6, %v44_v0  ;;  %v43_v6 = vld [vmem:[#allocation5] sm:$0xf] }
  0x28   :  { %v47_v3 = vmul.f32 0.4, %v45_v1  ;;  %s152_s17 = smov [#allocation7]  }
  0x29   :  { %s64_s19 = sshll.u32 %s152_s17, 4  ;;  %s65_s19 = int_to_ptr.vmem [resolvable:$true] %s64_s19 }
  0x2a   :  { %v48_v5 = vadd.f32 %v47_v3, %v46_v2  ;;  %s122_s1 = scalar_lea.vmem %s65_s19, 64  ;;  %p127_p3 = scmp.lt.s32.totalorder %s65_s19, %s65_s19 }
  0x2b   :  { %p123_p2 = scmp.ne.s32.totalorder %s65_s19, %s122_s1  ;;  %p128_p4 = scmp.lt.s32.totalorder %s122_s1, %s122_s1 }
  0x2c   :  { %v55_v7 = vmul.f32 %v74_v4, %v48_v5 }
  0x2d   :  { %p129_p5 = por %p128_p4, %p127_p3 }
  0x2e   :  { %v56_v8 = vadd.f32 %v55_v7, %v43_v6 }
  0x2f   :  { %p130_p6 = pnand %p129_p5, %p123_p2 }
  0x30   :  { %57 = vst [vmem:[#allocation7] sm:$0xf] %v56_v8 }
  0x31   :  { %133 = shalt.err (!%p130_p6)
}
  0x32   :  { %s134_s18 = scalar_lea.hbm %s224_s4, 64 }
  0x33   :  { %p135_p7 = scmp.ne.s32.totalorder %s224_s4, %s134_s18  ;;  %p138_p8 = scmp.lt.u32.totalorder %s134_s18, %s224_s4 }
  0x35   :  { %p140_p9 = pnand %p138_p8, %p135_p7 }
  0x37   :  { %143 = shalt.err (!%p140_p9)
}
  0x38   :  { %67 = dma.vmem_to_hbm [thread:$0]  %s65_s19, 64, %s224_s4, [#allocation4]  }
  0x39   :  { %148 = dma.done.wait [#allocation4], 64  }
  0x3a   :  { %149 = vsyncadd [#allocation4], 4294967232 }
  0x3b   :  { %71 = vsyncpa [#allocation3], 1 }
  0x3c   :  { %72 = vsyncpa [#allocation6], 1 }
  0x3d   :  { %73 = vsyncpa [#allocation4], 1 }

</bundles_post_ra>
